<compile_context>
chip_gen: v5e
topology: v5e:2x2
jax: 0.10.0
libtpu: 0.0.40
codegen_flags: <defaults>
</compile_context>

<pallas_src>
import functools

import jax
import jax.numpy as jnp
from jax import lax
from jax.experimental import pallas as pl
from jax.experimental.pallas import tpu as pltpu

# ---- small shapes consistent with the module (scaled down from 2048/4096/256) ----
B = 4            # per-device batch
C = 4            # input channels
HW = 16          # spatial size
DIM_IN = 32      # backbone feature dim (2048 in resnet50)
DIM_HIDDEN = 64  # 4096 in the original ProjectionHead
DIM = 32         # 256 in the original
T = 0.1

# Tile sizes chosen with real-scale VMEM budgets in mind (v7x: 64 MiB / ~32 MiB
# scoped; v6e/v5e: 128 MiB).  At the toy sizes here every dim collapses to "full".
ROW_TILE = 256
K_TILE = 512


def _row_tile(m, max_tile=ROW_TILE):
    tm = m if m <= max_tile else max_tile
    assert m % tm == 0, f"row count {m} must divide by tile {tm}"
    return tm


# --------------------------------------------------------------------------------
# Projection head: (Linear -> ReLU -> Linear) fused with F.normalize
# --------------------------------------------------------------------------------
def _proj_head_kernel(x_ref, w1_ref, b1_ref, w2_ref, b2_ref, o_ref, acc_ref):
    """Row tile (tm) x K-reduction grid.  acc_ref accumulates x @ w1 in f32."""
    # TODO(synk): the original ProjectionHead definition is not in this module; a
    # BatchNorm between the linears (if present) is omitted in this stand-in.
    kj = pl.program_id(1)

    @pl.when(kj == 0)
    def _():
        acc_ref[...] = jnp.zeros_like(acc_ref)

    acc_ref[...] += jnp.dot(x_ref[...], w1_ref[...],
                            preferred_element_type=jnp.float32)

    @pl.when(kj == pl.num_programs(1) - 1)
    def _():
        h = jnp.maximum(acc_ref[...] + b1_ref[...], 0.0)
        y = jnp.dot(h.astype(jnp.bfloat16), w2_ref[...],
                    preferred_element_type=jnp.float32) + b2_ref[...]
        sumsq = jnp.sum(y * y, axis=1, keepdims=True)
        # rsqrt on the EUP slot; clamp sumsq at (1e-12)^2 (representable in f32)
        # to match F.normalize's eps=1e-12 clamp on the norm.
        o_ref[...] = y * lax.rsqrt(jnp.maximum(sumsq, 1e-24))


def proj_head_normalize(x, w1, b1, w2, b2):
    m, k = x.shape
    hdim = w1.shape[1]
    d = w2.shape[1]
    tm = _row_tile(m)
    tk = k if k <= K_TILE else K_TILE
    assert k % tk == 0

    # bf16 operands for the MXU (f32 accumulate); biases stay f32.
    # (At production scale cache the bf16 weight copies outside the step.)
    return pl.pallas_call(
        _proj_head_kernel,
        out_shape=jax.ShapeDtypeStruct((m, d), jnp.float32),
        grid=(m // tm, k // tk),
        in_specs=[
            pl.BlockSpec((tm, tk), lambda i, kj: (i, kj)),
            pl.BlockSpec((tk, hdim), lambda i, kj: (kj, 0)),
            pl.BlockSpec((1, hdim), lambda i, kj: (0, 0)),
            pl.BlockSpec((hdim, d), lambda i, kj: (0, 0)),
            pl.BlockSpec((1, d), lambda i, kj: (0, 0)),
        ],
        out_specs=pl.BlockSpec((tm, d), lambda i, kj: (i, 0)),
        scratch_shapes=[pltpu.VMEM((tm, hdim), jnp.float32)],
        compiler_params=pltpu.CompilerParams(
            dimension_semantics=("parallel", "arbitrary")),
    )(x.astype(jnp.bfloat16), w1.astype(jnp.bfloat16), b1,
      w2.astype(jnp.bfloat16), b2)


# --------------------------------------------------------------------------------
# Pairwise similarity: (A @ B.T) / t, RHS pre-transposed in the wrapper
# --------------------------------------------------------------------------------
def _sim_kernel(a_ref, bt_ref, o_ref, *, inv_t):
    a = a_ref[...] * inv_t                       # fold 1/t into the small (tm, D) operand
    o_ref[...] = jnp.dot(a.astype(jnp.bfloat16), bt_ref[...],
                         preferred_element_type=jnp.float32)


def scaled_similarity(a, b, t):
    m, d = a.shape
    n = b.shape[0]
    tm = _row_tile(m)
    bt = b.astype(jnp.bfloat16).T                # (D, N): lane-major RHS, no in-kernel transpose
    return pl.pallas_call(
        functools.partial(_sim_kernel, inv_t=1.0 / t),
        out_shape=jax.ShapeDtypeStruct((m, n), jnp.float32),
        grid=(m // tm,),
        in_specs=[pl.BlockSpec((tm, d), lambda i: (i, 0)),
                  pl.BlockSpec((d, n), lambda i: (0, 0))],
        out_specs=pl.BlockSpec((tm, n), lambda i: (i, 0)),
        compiler_params=pltpu.CompilerParams(dimension_semantics=("parallel",)),
    )(a, bt)


# --------------------------------------------------------------------------------
# Fused similarity + sup_contra (graph loss): never materializes the prob matrix
# --------------------------------------------------------------------------------
def _sup_contra_fused_kernel(g_ref, allT_ref, mask_ref, o_ref, *,
                             inv_t, row_tile, total_rows):
    i = pl.program_id(0)

    g = g_ref[...] * inv_t                                     # scale (tm, D), not (tm, N)
    logits = jnp.dot(g.astype(jnp.bfloat16), allT_ref[...],
                     preferred_element_type=jnp.float32)       # (tm, n) on the MXU
    tm, n = logits.shape

    # diagonal mask generated in-kernel (rank 0 chunk: global row index == column)
    row = i * row_tile + lax.broadcasted_iota(jnp.int32, (tm, n), 0)
    col = lax.broadcasted_iota(jnp.int32, (tm, n), 1)
    d = jnp.where(row == col, 0.0, 1.0)                        # == 1 - diagnal_mask
    m = mask_ref[...] * d

    # numerically-stable masked log-softmax (max subtraction over valid columns)
    masked_logits = jnp.where(d > 0.0, logits, -jnp.inf)
    row_max = jnp.max(masked_logits, axis=1, keepdims=True)
    exp_logits = jnp.exp(masked_logits - row_max)              # diagonal -> exp(-inf) = 0
    denom = jnp.sum(exp_logits, axis=1, keepdims=True)
    log_prob = logits - row_max - jnp.log(denom)

    pos_sum = jnp.sum(m * log_prob, axis=1, keepdims=True)     # (tm, 1)
    cnt = jnp.maximum(jnp.sum(m, axis=1, keepdims=True), 1.0)  # guard singleton rows
    tile_loss = jnp.sum(-pos_sum * pl.reciprocal(cnt, approx=True))

    @pl.when(i == 0)
    def _():
        o_ref[0, 0] = 0.0
    o_ref[0, 0] += tile_loss * (1.0 / total_rows)


def sup_contra_fused(g, all_feat, mask, t):
    """WCL.sup_contra(g @ all_feat.T / t, mask, diagnal_mask) with everything fused."""
    m, d = g.shape
    n = all_feat.shape[0]
    tm = _row_tile(m)
    all_t = all_feat.astype(jnp.bfloat16).T                    # (D, N)
    out = pl.pallas_call(
        functools.partial(_sup_contra_fused_kernel,
                          inv_t=1.0 / t, row_tile=tm, total_rows=m),
        out_shape=jax.ShapeDtypeStruct((1, 1), jnp.float32),
        grid=(m // tm,),
        in_specs=[pl.BlockSpec((tm, d), lambda i: (i, 0)),
                  pl.BlockSpec((d, n), lambda i: (0, 0)),
                  pl.BlockSpec((tm, n), lambda i: (i, 0))],
        out_specs=pl.BlockSpec(memory_space=pltpu.MemorySpace.SMEM),
        compiler_params=pltpu.CompilerParams(dimension_semantics=("arbitrary",)),
    )(g, all_t, mask)
    return out[0, 0]


# --------------------------------------------------------------------------------
# Plain-JAX glue
# --------------------------------------------------------------------------------
def build_connected_component_mask(dist):
    """Equivalent of WCL.build_connected_component (scipy connected_components)
    as plain-JAX min-label propagation on the top-1 neighbor graph."""
    b = dist.shape[0]
    dist = dist - jnp.eye(b, dtype=dist.dtype) * 2.0
    y = jnp.argmax(dist, axis=1)                 # topk(dist, 1)[1]
    x = jnp.arange(b)
    adj = jnp.zeros((b, b), dtype=bool).at[x, y].set(True)
    adj = adj | adj.T | jnp.eye(b, dtype=bool)

    def body(_, labels):
        lab_mat = jnp.where(adj, labels[None, :], b)
        return jnp.minimum(labels, lab_mat.min(axis=1))

    labels = lax.fori_loop(0, b, body, jnp.arange(b))
    return (labels[:, None] == labels[None, :]).astype(jnp.float32)


def backbone(x_nchw, wb, bb):
    # TODO(synk): resnet50 is not defined in this module; deterministic stand-in:
    # global average pool over (H, W) + linear + ReLU producing (rows, DIM_IN).
    pooled = jnp.mean(x_nchw, axis=(2, 3))
    return jnp.maximum(pooled @ wb + bb, 0.0)


def off_diagonal(prob):
    """masked_select(prob, ~eye).reshape(n, n-1) as a deterministic gather."""
    # TODO(synk): at production scale this should be a lane-dense Pallas kernel
    # (non-128-multiple last dim forces masked partial stores downstream).
    n = prob.shape[0]
    rows = jnp.arange(n)[:, None]
    cols = jnp.arange(n - 1)[None, :]
    gather_idx = cols + (cols >= rows)
    return jnp.take_along_axis(prob, gather_idx, axis=1)


# --------------------------------------------------------------------------------
# WCL forward (world_size = 1, rank = 0)
# --------------------------------------------------------------------------------
def wcl_forward(params, x1, x2, t=T):
    b = x1.shape[0]

    # stand-in backbone has no BatchNorm, so running it on the stacked views is
    # numerically identical to two separate calls.
    backbone_both = backbone(jnp.concatenate([x1, x2], axis=0),
                             params["wb"], params["bb"])        # (2b, DIM_IN)

    # head1 on both views in ONE pallas_call (shared weights DMA'd once); the
    # stacked, normalized output is exactly torch.cat([feat1, feat2]).
    both = proj_head_normalize(backbone_both, *params["head1"])  # (2b, DIM)

    # concat_other_gather with world_size == 1 contributes nothing.
    prob = scaled_similarity(both, both, t)                      # (2b, 2b)
    logits = off_diagonal(prob)                                  # (2b, 2b-1)

    first_half_label = jnp.arange(b - 1, 2 * b - 1, dtype=jnp.int32)
    second_half_label = jnp.arange(0, b, dtype=jnp.int32)
    labels = jnp.concatenate([first_half_label, second_half_label])

    # head2 on both views in one call, then split.
    g_both = proj_head_normalize(backbone_both, *params["head2"])
    g1, g2 = g_both[:b], g_both[b:]

    # concat_all_gather with world_size == 1 is identity (all_feat == g).
    mask1 = build_connected_component_mask(scaled_similarity(g1, g1, 1.0))
    mask2 = build_connected_component_mask(scaled_similarity(g2, g2, 1.0))

    # diagonal mask (rank-0 chunk of eye(all_bs)) is generated inside the kernel.
    graph_loss = sup_contra_fused(g1, g1, mask2, t)
    graph_loss = graph_loss + sup_contra_fused(g2, g2, mask1, t)
    graph_loss = graph_loss / 2.0

    return logits, labels, graph_loss


# --------------------------------------------------------------------------------
# Deterministic parameter init + run
# --------------------------------------------------------------------------------
def init_params(key):
    ks = jax.random.split(key, 7)
    scale = 0.02

    def head(k1, k2):
        return (
            jax.random.normal(k1, (DIM_IN, DIM_HIDDEN), jnp.float32) * scale,
            jnp.zeros((1, DIM_HIDDEN), jnp.float32),
            jax.random.normal(k2, (DIM_HIDDEN, DIM), jnp.float32) * scale,
            jnp.zeros((1, DIM), jnp.float32),
        )

    return {
        "wb": jax.random.normal(ks[0], (C, DIM_IN), jnp.float32) * scale,
        "bb": jnp.zeros((DIM_IN,), jnp.float32),
        "head1": head(ks[1], ks[2]),
        "head2": head(ks[3], ks[4]),
    }


if __name__ == "__main__":
    key = jax.random.PRNGKey(0)
    k_params, k_x1, k_x2 = jax.random.split(key, 3)

    params = init_params(k_params)
    x1 = jax.random.normal(k_x1, (B, C, HW, HW), jnp.float32)
    x2 = jax.random.normal(k_x2, (B, C, HW, HW), jnp.float32)

    logits, labels, graph_loss = wcl_forward(params, x1, x2, t=T)
    jax.block_until_ready(logits)
    jax.block_until_ready(labels)
    jax.block_until_ready(graph_loss)

    assert logits.shape == (2 * B, 2 * B - 1)
    assert labels.shape == (2 * B,)
    assert graph_loss.shape == ()
    assert bool(jnp.isfinite(graph_loss))

    print("KERNEL_OK")
</pallas_src>

<mosaic_0001>
module attributes {stable_mosaic.version = 11 : i64} {
  func.func @_proj_head_kernel(%arg0: i32, %arg1: i32, %arg2: memref<8x32xbf16, #tpu.memory_space<vmem>>, %arg3: memref<32x64xbf16, #tpu.memory_space<vmem>>, %arg4: memref<1x64xf32, #tpu.memory_space<vmem>>, %arg5: memref<64x32xbf16, #tpu.memory_space<vmem>>, %arg6: memref<1x32xf32, #tpu.memory_space<vmem>>, %arg7: memref<8x32xf32, #tpu.memory_space<vmem>>, %arg8: memref<8x64xf32, #tpu.memory_space<vmem>>) attributes {dimension_semantics = [#tpu.dimension_semantics<parallel>, #tpu.dimension_semantics<arbitrary>], iteration_bounds = array<i64: 1, 1>, scalar_prefetch = 0 : i64, scratch_operands = 1 : i64, tpu.core_type = #tpu.core_type<tc>, window_params = [{transform_indices = @transform_0, window_bounds = array<i64: 8, 32>}, {transform_indices = @transform_1, window_bounds = array<i64: 32, 64>}, {pipeline_mode = #tpu.pipeline_mode<synchronous>, transform_indices = @transform_2, window_bounds = array<i64: 1, 64>}, {pipeline_mode = #tpu.pipeline_mode<synchronous>, transform_indices = @transform_3, window_bounds = array<i64: 64, 32>}, {pipeline_mode = #tpu.pipeline_mode<synchronous>, transform_indices = @transform_4, window_bounds = array<i64: 1, 32>}, {transform_indices = @transform_5, window_bounds = array<i64: 8, 32>}]} {
    %c0_i32 = arith.constant 0 : i32
    %0 = arith.cmpi eq, %arg1, %c0_i32 : i32
    %1 = arith.extui %0 : i1 to i32
    %c0_i32_0 = arith.constant 0 : i32
    %2 = arith.cmpi ne, %1, %c0_i32_0 : i32
    scf.if %2 {
      %cst_10 = arith.constant 0.000000e+00 : f32
      %12 = vector.broadcast %cst_10 : f32 to vector<8x64xf32>
      %c0_11 = arith.constant 0 : index
      %c0_12 = arith.constant 0 : index
      %13 = vector.load %arg8[%c0_11, %c0_12] : memref<8x64xf32, #tpu.memory_space<vmem>>, vector<8x64xf32>
      tpu.vector_store %arg8[%c0_11, %c0_12], %12 {strides = array<i32>} : memref<8x64xf32, #tpu.memory_space<vmem>>, vector<8x64xf32>,
    } else {
    }
    %c0 = arith.constant 0 : index
    %c0_1 = arith.constant 0 : index
    %3 = vector.load %arg8[%c0, %c0_1] : memref<8x64xf32, #tpu.memory_space<vmem>>, vector<8x64xf32>
    %c0_2 = arith.constant 0 : index
    %c0_3 = arith.constant 0 : index
    %4 = vector.load %arg2[%c0_2, %c0_3] : memref<8x32xbf16, #tpu.memory_space<vmem>>, vector<8x32xbf16>
    %c0_4 = arith.constant 0 : index
    %c0_5 = arith.constant 0 : index
    %5 = vector.load %arg3[%c0_4, %c0_5] : memref<32x64xbf16, #tpu.memory_space<vmem>>, vector<32x64xbf16>
    %cst = arith.constant dense<0.000000e+00> : vector<8x64xf32>
    %6 = tpu.matmul %4, %5, %cst {dimension_numbers = #tpu.dot_dimension_numbers<[1], [0], [0], [1], [0, 0, 1, 1], [], []>} : vector<8x32xbf16>, vector<32x64xbf16>, vector<8x64xf32> -> vector<8x64xf32>
    %7 = arith.addf %3, %6 : vector<8x64xf32>
    %c0_6 = arith.constant 0 : index
    %c0_7 = arith.constant 0 : index
    %8 = vector.load %arg8[%c0_6, %c0_7] : memref<8x64xf32, #tpu.memory_space<vmem>>, vector<8x64xf32>
    tpu.vector_store %arg8[%c0_6, %c0_7], %7 {strides = array<i32>} : memref<8x64xf32, #tpu.memory_space<vmem>>, vector<8x64xf32>,
    %c0_i32_8 = arith.constant 0 : i32
    %9 = arith.cmpi eq, %arg1, %c0_i32_8 : i32
    %10 = arith.extui %9 : i1 to i32
    %c0_i32_9 = arith.constant 0 : i32
    %11 = arith.cmpi ne, %10, %c0_i32_9 : i32
    scf.if %11 {
      %c0_10 = arith.constant 0 : index
      %c0_11 = arith.constant 0 : index
      %12 = vector.load %arg8[%c0_10, %c0_11] : memref<8x64xf32, #tpu.memory_space<vmem>>, vector<8x64xf32>
      %c0_12 = arith.constant 0 : index
      %c0_13 = arith.constant 0 : index
      %13 = vector.load %arg4[%c0_12, %c0_13] : memref<1x64xf32, #tpu.memory_space<vmem>>, vector<1x64xf32>
      %14 = vector.broadcast %13 : vector<1x64xf32> to vector<8x64xf32>
      %15 = arith.addf %12, %14 : vector<8x64xf32>
      %cst_14 = arith.constant 0.000000e+00 : f32
      %16 = vector.broadcast %cst_14 : f32 to vector<8x64xf32>
      %17 = arith.maximumf %15, %16 : vector<8x64xf32>
      %18 = arith.truncf %17 : vector<8x64xf32> to vector<8x64xbf16>
      %c0_15 = arith.constant 0 : index
      %c0_16 = arith.constant 0 : index
      %19 = vector.load %arg5[%c0_15, %c0_16] : memref<64x32xbf16, #tpu.memory_space<vmem>>, vector<64x32xbf16>
      %cst_17 = arith.constant dense<0.000000e+00> : vector<8x32xf32>
      %20 = tpu.matmul %18, %19, %cst_17 {dimension_numbers = #tpu.dot_dimension_numbers<[1], [0], [0], [1], [0, 0, 1, 1], [], []>} : vector<8x64xbf16>, vector<64x32xbf16>, vector<8x32xf32> -> vector<8x32xf32>
      %c0_18 = arith.constant 0 : index
      %c0_19 = arith.constant 0 : index
      %21 = vector.load %arg6[%c0_18, %c0_19] : memref<1x32xf32, #tpu.memory_space<vmem>>, vector<1x32xf32>
      %22 = vector.broadcast %21 : vector<1x32xf32> to vector<8x32xf32>
      %23 = arith.addf %20, %22 : vector<8x32xf32>
      %24 = arith.mulf %23, %23 : vector<8x32xf32>
      %cst_20 = arith.constant dense<0.000000e+00> : vector<8xf32>
      %25 = vector.multi_reduction <add>, %24, %cst_20 [1] : vector<8x32xf32> to vector<8xf32>
      %26 = vector.shape_cast %25 : vector<8xf32> to vector<8x1xf32>
      %cst_21 = arith.constant 1.000000e-24 : f32
      %27 = vector.broadcast %cst_21 : f32 to vector<8x1xf32>
      %28 = arith.maximumf %26, %27 : vector<8x1xf32>
      %29 = math.rsqrt %28 : vector<8x1xf32>
      %30 = vector.broadcast %29 : vector<8x1xf32> to vector<8x32xf32>
      %31 = arith.mulf %23, %30 : vector<8x32xf32>
      %c0_22 = arith.constant 0 : index
      %c0_23 = arith.constant 0 : index
      %32 = vector.load %arg7[%c0_22, %c0_23] : memref<8x32xf32, #tpu.memory_space<vmem>>, vector<8x32xf32>
      tpu.vector_store %arg7[%c0_22, %c0_23], %31 {strides = array<i32>} : memref<8x32xf32, #tpu.memory_space<vmem>>, vector<8x32xf32>,
    } else {
    }
    return
  }
  func.func @transform_0(%arg0: i32, %arg1: i32) -> (i32, i32) {
    %c0_i32 = arith.constant 0 : i32
    return %arg0, %arg1 : i32, i32
  }
  func.func @transform_1(%arg0: i32, %arg1: i32) -> (i32, i32) {
    %c0_i32 = arith.constant 0 : i32
    %c0_i32_0 = arith.constant 0 : i32
    return %arg1, %c0_i32 : i32, i32
  }
  func.func @transform_2(%arg0: i32, %arg1: i32) -> (i32, i32) {
    %c0_i32 = arith.constant 0 : i32
    %c0_i32_0 = arith.constant 0 : i32
    %c0_i32_1 = arith.constant 0 : i32
    return %c0_i32, %c0_i32_0 : i32, i32
  }
  func.func @transform_3(%arg0: i32, %arg1: i32) -> (i32, i32) {
    %c0_i32 = arith.constant 0 : i32
    %c0_i32_0 = arith.constant 0 : i32
    %c0_i32_1 = arith.constant 0 : i32
    return %c0_i32, %c0_i32_0 : i32, i32
  }
  func.func @transform_4(%arg0: i32, %arg1: i32) -> (i32, i32) {
    %c0_i32 = arith.constant 0 : i32
    %c0_i32_0 = arith.constant 0 : i32
    %c0_i32_1 = arith.constant 0 : i32
    return %c0_i32, %c0_i32_0 : i32, i32
  }
  func.func @transform_5(%arg0: i32, %arg1: i32) -> (i32, i32) {
    %c0_i32 = arith.constant 0 : i32
    %c0_i32_0 = arith.constant 0 : i32
    return %arg0, %c0_i32 : i32, i32
  }
}

</mosaic_0001>

<bundles_post_ra>
// kernel: tpu_custom_call.1
= control target key start
LH: loop header
LB: loop body
LE: loop exit
PB: predicated region body
PF: predicated region fallthrough
CT: control target
= control target key end

     0   :  { %vm26_vm0 = vcmask 523264   ;;  %v226_v2 = vmov 0.0   ;;  %s294_s0 = inlined_call_operand.vmem [shape: bf16[8,32], index: 0, kind: input, shape index: {}]   ;;  %s295_s1 = inlined_call_operand.vmem [shape: bf16[32,64], index: 1, kind: input, shape index: {}]   ;;  %s296_s2 = inlined_call_operand.vmem [shape: f32[1,64], index: 2, kind: input, shape index: {}]   ;;  %s297_s3 = inlined_call_operand.vmem [shape: bf16[64,32], index: 3, kind: input, shape index: {}]   ;;  %s298_s4 = inlined_call_operand.vmem [shape: f32[1,32], index: 4, kind: input, shape index: {}]   ;;  %s299_s5 = inlined_call_operand.hbm [shape: f32[8,32], index: 5, kind: output, shape index: {}]  }
   0x1   :  { %v189_v0 = vld [vmem:[%s295_s1 + $0x8] sm:$0xff]  ;;  %v188_v1 = vld [vmem:[%s295_s1] sm:$0xff]  ;;  %27 = vst.msk [vmem:[#allocation2] sm:$0xff] %vm26_vm0, %v226_v2 }
   0x2   :  { %56 = vmatpush.bf16.msra.mxu0 %v189_v0 }
   0x3   :  { %10 = vsyncpa [#allocation4], 0  ;;  %v29_v3 = vld [vmem:[%s294_s0] sm:$0xf]  ;;  %vm46_vm1 = vcmask 261120   ;;  %v193_v4 = vld [vmem:[%s297_s3 + $0x18] sm:$0xff] }
   0x4   :  { %120 = vmatpush.bf16.msra.mxu1 %v193_v4  ;;  %v192_v5 = vld [vmem:[%s297_s3 + $0x10] sm:$0xff]  ;;  %v191_v6 = vld [vmem:[%s297_s3 + $0x8] sm:$0xff]  ;;  %v190_v7 = vld [vmem:[%s297_s3] sm:$0xff]  ;;  %s153_s10 = sshll.u32 %s299_s5, 4  ;;  %s154_s10 = int_to_ptr.hbm [resolvable:$true] %s153_s10 }
   0x5   :  { %v196_v11 = vld [vmem:[%s296_s2] ss:$0 sm:$0xff]  ;;  %s227_s2 = smov [#allocation3]  }
   0x6   :  { %57 = vmatpush.bf16.msra.mxu0 %v188_v1  ;;  %v197_v17 = vld [vmem:[%s298_s4] ss:$0 sm:$0xff]  ;;  %s151_s3 = sshll.u32 %s227_s2, 4  ;;  %s152_s3 = int_to_ptr.vmem [resolvable:$true] %s151_s3 }
   0x8   :  { %121 = vmatpush.bf16.msra.mxu1 %v192_v5  ;;  %v28_v8 = vld [vmem:[#allocation2] sm:$0xff] }
   0x9   :  { %170 = vmatmul.msk.bf16.vlgmr.msra.gmra.mxu0 %vm46_vm1, %v29_v3 }
   0xc   :  { %122 = vmatpush.bf16.msra.mxu1 %v191_v6 }
  0x10   :  { %123 = vmatpush.bf16.msra.mxu1 %v190_v7 }
  0x86   :  { %v59_v9 = vpop.f32.mrf.mxu0 }
  0x87   :  { %v63_v10 = vadd.f32 %v59_v9, %v28_v8 }
  0x89   :  { %65 = vst.msk [vmem:[#allocation2] sm:$0xff] %vm26_vm0, %v63_v10 }
  0x8e   :  { %v61_v12 = vpop.f32.mrf.mxu0 }
  0x90   :  { %v69_v13 = vld [vmem:[#allocation2] sm:$0xff] }
  0x91   :  { %v74_v14 = vadd.f32 %v196_v11, %v69_v13 }
  0x93   :  { %v75_v15 = vmax.f32 %v74_v14, 0.0 }
  0x95   :  { %v76_v16 = vpack.c.bf16 %v75_v15, %v75_v15 }
  0x97   :  { %187 = vmatmul.msk.bf16.vlgmr.msra.gmra.mxu1 %vm26_vm0, %v76_v16 }
 0x114   :  { %v125_v18 = vpop.f32.mrf.mxu1 }
 0x115   :  { %v126_v19 = vadd.f32 %v197_v17, %v125_v18 }
 0x117   :  { %v129_v20 = vmul.f32 %v126_v19, %v126_v19 }
 0x119   :  { %v130_v21 = vsel %vm46_vm1, %v129_v20, 0.0 }
 0x11a   :  { %131 = vadd.xlane.f32.xlu0 %v130_v21 }
 0x11c   :  { %v127_v22 = vpop.f32.mrf.mxu1 }
 0x18d   :  { %v132_v23 = vpop.xlane.xlu0 %131 }
 0x18e   :  { %v133_v24 = vmax.f32 %v132_v23, 1e-24 }
 0x190   :  { %198 = vrsqrt.f32 %v133_v24  ;;  %vm140_vm3 = vweird.f32 %v133_v24 }
 0x196   :  { %v199_v25 = vpop.eup %198 }
 0x197   :  { %v135_v26 = vmul.f32 %v199_v25, %v133_v24  ;;  %vm141_vm2 = vweird.f32 %v199_v25 }
 0x198   :  { %vm142_vm4 = vmor %vm140_vm3, %vm141_vm2 }
 0x199   :  { %v136_v27 = vmul.f32 %v199_v25, %v135_v26 }
 0x19b   :  { %v137_v28 = vmul.f32 0.5, %v136_v27 }
 0x19d   :  { %v138_v29 = vsub.f32 1.5, %v137_v28 }
 0x19f   :  { %v139_v30 = vmul.f32 %v199_v25, %v138_v29 }
 0x1a1   :  { %v143_v31 = vsel %vm142_vm4, %v199_v25, %v139_v30 }
 0x1a2   :  { %v144_v32 = vmul.f32 %v143_v31, %v126_v19 }
 0x1a4   :  { %145 = vst.msk [vmem:[#allocation3] sm:$0xff] %vm46_vm1, %v144_v32 }
 0x1a5   :  { %156 = dma.vmem_to_hbm [thread:$0]  %s152_s3, 128, %s154_s10, [#allocation4]  }
 0x1a6   :  { %224 = dma.done.wait [#allocation4], 128  }
 0x1a7   :  { %225 = vsyncadd [#allocation4], 4294967168 }
 0x1a8   :  { %161 = vsyncpa [#allocation4], 1 }

</bundles_post_ra>
